<compile_context>
chip_gen: v6e
topology: v6e:2x2x1
jax: 0.10.0
libtpu: 0.0.40
codegen_flags: <defaults>
</compile_context>

<pallas_src>
import jax
import jax.numpy as jnp
from jax.experimental import pallas as pl
from jax.experimental.pallas import tpu as pltpu


def _nrmse_kernel(gt_ref, pred_ref, sse_ref, refsq_ref):
    """Per grid step: accumulate per-row sum((gt-pred)^2) and sum(gt^2)."""
    j = pl.program_id(1)  # feature-chunk (reduction) axis

    g = gt_ref[...].astype(jnp.float32)
    p = pred_ref[...].astype(jnp.float32)
    d = g - p
    sse_t = jnp.sum(d * d, axis=1, keepdims=True)
    ref_t = jnp.sum(g * g, axis=1, keepdims=True)

    @pl.when(j == 0)
    def _():
        sse_ref[...] = sse_t
        refsq_ref[...] = ref_t

    @pl.when(j > 0)
    def _():
        sse_ref[...] = sse_ref[...] + sse_t
        refsq_ref[...] = refsq_ref[...] + ref_t


def _row_sums(gt_rows, pred_rows, row_block, tn):
    """gt_rows/pred_rows: (rows, m) with rows % row_block == 0, m % tn == 0.

    Returns per-row (sum((gt-pred)^2), sum(gt^2)) as two (rows,) f32 arrays.
    """
    rows, m = gt_rows.shape
    grid = (rows // row_block, m // tn)

    in_spec = pl.BlockSpec((row_block, tn), lambda i, j: (i, j))
    out_spec = pl.BlockSpec((row_block, 1), lambda i, j: (i, 0))

    sse, refsq = pl.pallas_call(
        _nrmse_kernel,
        out_shape=(
            jax.ShapeDtypeStruct((rows, 1), jnp.float32),
            jax.ShapeDtypeStruct((rows, 1), jnp.float32),
        ),
        grid_spec=pltpu.PrefetchScalarGridSpec(
            num_scalar_prefetch=0,
            grid=grid,
            in_specs=[in_spec, in_spec],
            out_specs=[out_spec, out_spec],
        ),
        compiler_params=pltpu.CompilerParams(
            dimension_semantics=("parallel", "arbitrary"),
        ),
    )(gt_rows, pred_rows)
    return sse[:, 0], refsq[:, 0]


def nrmse_pallas(gt, pred, batch=True, reduce=True):
    """Mirror of the PyTorch `nrmse` function (gt = reference/denominator)."""
    # Complex inputs: ||z|| over complex == ||(re, im)|| over reals.
    if jnp.iscomplexobj(gt) or jnp.iscomplexobj(pred):
        gt = jnp.stack([jnp.real(gt), jnp.imag(gt)], axis=-1)
        pred = jnp.stack([jnp.real(pred), jnp.imag(pred)], axis=-1)

    B = gt.shape[0] if batch else 1
    gt2 = jnp.reshape(gt, (B, -1))        # native dtype, no wrapper upcast
    pred2 = jnp.reshape(pred, (B, -1))
    N = gt2.shape[1]

    # Sublane fill: split each batch row into r sub-rows so rows % 8 == 0.
    r = 8 if B < 8 else 1
    rows = B * r
    m = -(-N // r)  # ceil(N / r)

    elem = jnp.dtype(gt2.dtype).itemsize
    target = 1 << 20  # ~1 MiB per input block -> ~4 MiB double-buffered VMEM

    row_block = 8 if rows % 8 == 0 else rows
    tn = max(128, (target // (row_block * elem)) // 128 * 128)
    if m <= tn:  # small problem: single feature chunk, no reduction loop
        tn = max(128, -(-m // 128) * 128)
    m_pad = -(-m // tn) * tn
    # Grow the (parallel) row block while the block-size budget allows and at
    # least two row blocks remain (keeps both v7x TensorCores busy).
    while (rows % (row_block * 2) == 0
           and rows // (row_block * 2) >= 2
           and row_block * 2 * tn * elem <= target):
        row_block *= 2

    n_pad = r * m_pad
    if n_pad != N:
        # Zero padding is exact: padded elements contribute 0 to both sums.
        gt2 = jnp.pad(gt2, ((0, 0), (0, n_pad - N)))
        pred2 = jnp.pad(pred2, ((0, 0), (0, n_pad - N)))
    gt_rows = jnp.reshape(gt2, (rows, m_pad))
    pred_rows = jnp.reshape(pred2, (rows, m_pad))

    sse, refsq = _row_sums(gt_rows, pred_rows, row_block, tn)

    # Fold the r sub-rows of each batch element (row-major reshape keeps them
    # contiguous) and finish with sqrt / divide / mean on tiny arrays in JAX.
    sse_b = jnp.sum(jnp.reshape(sse, (B, r)), axis=1)
    ref_b = jnp.sum(jnp.reshape(refsq, (B, r)), axis=1)
    err = jnp.sqrt(sse_b) / jnp.sqrt(ref_b)  # ||gt||==0 -> inf/nan, as in torch

    if reduce:
        return jnp.mean(err)
    return err


class NRMSELossPallas:
    def __init__(self, batch=True, reduce=True):
        self.batch = batch
        self.reduce = reduce

    def __call__(self, pred, gt, data_range=None):
        # Matches torch forward: nrmse(pred, gt) with nrmse(gt, pred) signature
        # -> the "gt" (denominator) role is forward's FIRST argument.
        # data_range is accepted but unused by the original module.
        return nrmse_pallas(pred, gt, batch=self.batch, reduce=self.reduce)


if __name__ == "__main__":
    # NCHW-like shapes (layout irrelevant after flatten): B=2, C=4, H=W=16
    key = jax.random.PRNGKey(0)
    k1, k2 = jax.random.split(key)
    pred = jax.random.uniform(k1, (2, 4, 16, 16), dtype=jnp.float32)
    gt = pred + 0.05 * jax.random.normal(k2, (2, 4, 16, 16), dtype=jnp.float32)

    loss_fn = NRMSELossPallas(batch=True, reduce=True)
    out = loss_fn(pred, gt)
    jax.block_until_ready(out)

    # pure-JAX reference: error = ||pred - gt|| / ||pred|| per batch, then mean
    p = jnp.reshape(pred, (2, -1))
    g = jnp.reshape(gt, (2, -1))
    err_ref = jnp.linalg.norm(p - g, axis=1) / jnp.linalg.norm(p, axis=1)
    ref = jnp.mean(err_ref)
    assert jnp.allclose(out, ref, rtol=1e-5, atol=1e-6), (out, ref)

    # unreduced path
    loss_fn_nr = NRMSELossPallas(batch=True, reduce=False)
    out_vec = loss_fn_nr(pred, gt)
    jax.block_until_ready(out_vec)
    assert jnp.allclose(out_vec, err_ref, rtol=1e-5, atol=1e-6), (out_vec, err_ref)

    print("KERNEL_OK")
</pallas_src>

<mosaic_0001>
module attributes {stable_mosaic.version = 11 : i64} {
  func.func @_nrmse_kernel(%arg0: i32, %arg1: i32, %arg2: memref<8x128xf32, #tpu.memory_space<vmem>>, %arg3: memref<8x128xf32, #tpu.memory_space<vmem>>, %arg4: memref<8x1xf32, #tpu.memory_space<vmem>>, %arg5: memref<8x1xf32, #tpu.memory_space<vmem>>) attributes {dimension_semantics = [#tpu.dimension_semantics<parallel>, #tpu.dimension_semantics<arbitrary>], iteration_bounds = array<i64: 2, 1>, scalar_prefetch = 0 : i64, scratch_operands = 0 : i64, tpu.core_type = #tpu.core_type<tc>, window_params = [{transform_indices = @transform_0, window_bounds = array<i64: 8, 128>}, {transform_indices = @transform_1, window_bounds = array<i64: 8, 128>}, {transform_indices = @transform_2, window_bounds = array<i64: 8, 1>}, {transform_indices = @transform_3, window_bounds = array<i64: 8, 1>}]} {
    %c0 = arith.constant 0 : index
    %c0_0 = arith.constant 0 : index
    %0 = vector.load %arg2[%c0, %c0_0] : memref<8x128xf32, #tpu.memory_space<vmem>>, vector<8x128xf32>
    %c0_1 = arith.constant 0 : index
    %c0_2 = arith.constant 0 : index
    %1 = vector.load %arg3[%c0_1, %c0_2] : memref<8x128xf32, #tpu.memory_space<vmem>>, vector<8x128xf32>
    %2 = arith.subf %0, %1 : vector<8x128xf32>
    %3 = arith.mulf %2, %2 : vector<8x128xf32>
    %cst = arith.constant dense<0.000000e+00> : vector<8xf32>
    %4 = vector.multi_reduction <add>, %3, %cst [1] : vector<8x128xf32> to vector<8xf32>
    %5 = vector.shape_cast %4 : vector<8xf32> to vector<8x1xf32>
    %6 = arith.mulf %0, %0 : vector<8x128xf32>
    %cst_3 = arith.constant dense<0.000000e+00> : vector<8xf32>
    %7 = vector.multi_reduction <add>, %6, %cst_3 [1] : vector<8x128xf32> to vector<8xf32>
    %8 = vector.shape_cast %7 : vector<8xf32> to vector<8x1xf32>
    %c0_i32 = arith.constant 0 : i32
    %9 = arith.cmpi eq, %arg1, %c0_i32 : i32
    %10 = arith.extui %9 : i1 to i32
    %c0_i32_4 = arith.constant 0 : i32
    %11 = arith.cmpi ne, %10, %c0_i32_4 : i32
    scf.if %11 {
      %c0_7 = arith.constant 0 : index
      %c0_8 = arith.constant 0 : index
      %15 = vector.load %arg4[%c0_7, %c0_8] : memref<8x1xf32, #tpu.memory_space<vmem>>, vector<8x1xf32>
      tpu.vector_store %arg4[%c0_7, %c0_8], %5 {strides = array<i32>} : memref<8x1xf32, #tpu.memory_space<vmem>>, vector<8x1xf32>,
      %c0_9 = arith.constant 0 : index
      %c0_10 = arith.constant 0 : index
      %16 = vector.load %arg5[%c0_9, %c0_10] : memref<8x1xf32, #tpu.memory_space<vmem>>, vector<8x1xf32>
      tpu.vector_store %arg5[%c0_9, %c0_10], %8 {strides = array<i32>} : memref<8x1xf32, #tpu.memory_space<vmem>>, vector<8x1xf32>,
    } else {
    }
    %c0_i32_5 = arith.constant 0 : i32
    %12 = arith.cmpi sgt, %arg1, %c0_i32_5 : i32
    %13 = arith.extui %12 : i1 to i32
    %c0_i32_6 = arith.constant 0 : i32
    %14 = arith.cmpi ne, %13, %c0_i32_6 : i32
    scf.if %14 {
      %c0_7 = arith.constant 0 : index
      %c0_8 = arith.constant 0 : index
      %15 = vector.load %arg4[%c0_7, %c0_8] : memref<8x1xf32, #tpu.memory_space<vmem>>, vector<8x1xf32>
      %16 = arith.addf %15, %5 : vector<8x1xf32>
      %c0_9 = arith.constant 0 : index
      %c0_10 = arith.constant 0 : index
      %17 = vector.load %arg4[%c0_9, %c0_10] : memref<8x1xf32, #tpu.memory_space<vmem>>, vector<8x1xf32>
      tpu.vector_store %arg4[%c0_9, %c0_10], %16 {strides = array<i32>} : memref<8x1xf32, #tpu.memory_space<vmem>>, vector<8x1xf32>,
      %c0_11 = arith.constant 0 : index
      %c0_12 = arith.constant 0 : index
      %18 = vector.load %arg5[%c0_11, %c0_12] : memref<8x1xf32, #tpu.memory_space<vmem>>, vector<8x1xf32>
      %19 = arith.addf %18, %8 : vector<8x1xf32>
      %c0_13 = arith.constant 0 : index
      %c0_14 = arith.constant 0 : index
      %20 = vector.load %arg5[%c0_13, %c0_14] : memref<8x1xf32, #tpu.memory_space<vmem>>, vector<8x1xf32>
      tpu.vector_store %arg5[%c0_13, %c0_14], %19 {strides = array<i32>} : memref<8x1xf32, #tpu.memory_space<vmem>>, vector<8x1xf32>,
    } else {
    }
    return
  }
  func.func @transform_0(%arg0: i32, %arg1: i32) -> (i32, i32) {
    %c0_i32 = arith.constant 0 : i32
    return %arg0, %arg1 : i32, i32
  }
  func.func @transform_1(%arg0: i32, %arg1: i32) -> (i32, i32) {
    %c0_i32 = arith.constant 0 : i32
    return %arg0, %arg1 : i32, i32
  }
  func.func @transform_2(%arg0: i32, %arg1: i32) -> (i32, i32) {
    %c0_i32 = arith.constant 0 : i32
    %c0_i32_0 = arith.constant 0 : i32
    return %arg0, %c0_i32 : i32, i32
  }
  func.func @transform_3(%arg0: i32, %arg1: i32) -> (i32, i32) {
    %c0_i32 = arith.constant 0 : i32
    %c0_i32_0 = arith.constant 0 : i32
    return %arg0, %c0_i32 : i32, i32
  }
}

</mosaic_0001>

<bundles_post_ra>
// kernel: tpu_custom_call.1
= control target key start
LH: loop header
LB: loop body
LE: loop exit
PB: predicated region body
PF: predicated region fallthrough
CT: control target
= control target key end

     0   :  { %9 = vsyncpa [#allocation3], 0  ;;  %s746_s0 = inlined_call_operand.hbm [shape: f32[16,128], index: 0, kind: input, shape index: {}]   ;;  %s747_s1 = inlined_call_operand.hbm [shape: f32[16,128], index: 1, kind: input, shape index: {}]   ;;  %s748_s2 = inlined_call_operand.vmem [shape: f32[16,1], index: 2, kind: output, shape index: {0}]   ;;  %s749_s3 = inlined_call_operand.vmem [shape: f32[16,1], index: 3, kind: output, shape index: {1}]  }
   0x1   :  { %11 = vsyncpa [#allocation3 + $0x1], 0 }
   0x2   :  { %12 = vsyncpa [#allocation5], 0 }
   0x3   :  { %14 = vsyncpa [#allocation5 + $0x1], 0  ;;  %s617_s12 = smov 0   ;;  %s619_s13 = smov 0  }
   0x4   :  { %s621_s14 = smov 0   ;;  %s623_s15 = smov 0  }
   0x5   :  { %s625_s16 = smov 0   ;;  %s627_s17 = smov 0  }
   0x6 LB: > { %s408_s18 = sadd.s32 4294967295, %s593_s17   ;;  %s32_s19 = sadd.s32 1, %s589_s16  ;;  %s593_s17 = sphi %s627_s17, %s20_s17   ;;  %s589_s16 = sphi %s625_s16, %s758_s16   ;;  %s585_s15 = sphi %s623_s15, %s757_s15   ;;  %s581_s14 = sphi %s621_s14, %s756_s14   ;;  %s577_s13 = sphi %s619_s13, %s755_s13   ;;  %s573_s12 = sphi %s617_s12, %s754_s12  }
   0x7   : > { %p34_p0 = scmp.ge.s32.totalorder %s32_s19, 2  ;;  %s41_s20 = sadd.s32 1, %s581_s14 }
   0x8   : > { %p48_p1 = scmp.ne.s32.totalorder %s581_s14, %s577_s13  ;;  %p49_p2 = scmp.eq.s32.totalorder %s593_s17, 0 }
   0x9   : > { %s760_s19 = smov (%p34_p0, %s32_s19), 0  ;;  %p54_p4 = scmp.ne.s32.totalorder %s577_s13, %s573_s12 }
   0xa   : > { %p653_p3 = por %p49_p2, %p48_p1  ;;  %s36_s22 = ssub.s32 %s589_s16, %s760_s19 }
   0xb   : > { %p55_p5 = scmp.eq.s32.totalorder %s408_s18, 0  ;;  %p39_p6 = scmp.eq.s32.totalorder %s36_s22, 0 }
   0xc   : > { %p434_p8 = scmp.lt.s32.totalorder %s593_s17, 2  ;;  %s669_s25 = sand.u32 1, %s581_s14  }
   0xd   : > { %p660_p7 = por %p55_p5, %p54_p4  ;;  %s413_s26 = sshll.u32 %s589_s16, 7 }
   0xe   : > { %s666_s24 = scalar_select %p39_p6, %s581_s14, %s41_s20  }
   0xf   : > { %s412_s27 = sshll.u32 %s669_s25, 3  ;;  %s168_s30 = scalar_lea.hbm %s746_s0, %s413_s26 }
  0x10   : > { %s162_s4 = scalar_lea.vmem [#allocation2], %s412_s27  ;;  %p678_p9 = pnand %p434_p8, %p653_p3 }
  0x11   : > { %s170_s5 = sshll.u32 %s162_s4, 4  ;;  %p416_p10 = scmp.ge.s32.totalorder %s593_s17, 1  ;;  %s171_s5 = int_to_ptr.vmem [resolvable:$true] %s170_s5 }
  0x12   : > { %p194_p11 = scmp.lt.s32.totalorder %s593_s17, 3  ;;  %s159_s7 = scalar_lea.sflag [#allocation3], %s669_s25 }
  0x13   : > { %p485_p12 = pneg %p678_p9  ;;  %s496_s8 = scalar_lea.vmem %s171_s5, 128 }
  0x14   : > { %p497_p13 = scmp.ne.s32.totalorder %s171_s5, %s496_s8  ;;  %s595_s9 = smov [#allocation2]  }
  0x15   : > { %s501_s10 = sshll.u32 %s595_s9, 4  ;;  %s502_s10 = int_to_ptr.vmem [resolvable:$false] %s501_s10 }
  0x16   : > { %p499_p0 = pnand %p497_p13, %p485_p12  ;;  %s503_s11 = scalar_lea.vmem %s502_s10, 256 }
  0x17   : > { %p504_p2 = scmp.lt.s32.totalorder %s171_s5, %s502_s10  ;;  %p505_p3 = scmp.lt.s32.totalorder %s503_s11, %s496_s8 }
  0x18   : > { %p500_p1 = pneg %p499_p0 }
  0x19   : > { %p506_p4 = por %p505_p3, %p504_p2 }
  0x1b   : > { %p507_p5 = pnand %p506_p4, %p500_p1 }
  0x1d   : > { %510 = shalt.err (!%p507_p5)
}
  0x1e   : > { %430 = dma.hbm_to_vmem [thread:$0]  (!%p678_p9), %s168_s30, 128, %s171_s5, %s159_s7  }
  0x1f   : > { %p696_p6 = pnand %p416_p10, %p194_p11  ;;  %s187_s21 = scalar_lea.hbm %s747_s1, %s413_s26 }
  0x20   : > { %s181_s22 = scalar_lea.vmem [#allocation4], %s412_s27  ;;  %s178_s29 = scalar_lea.sflag [#allocation5], %s669_s25 }
  0x21   : > { %s189_s28 = sshll.u32 %s181_s22, 4  ;;  %s596_s30 = smov [#allocation4]   ;;  %s190_s28 = int_to_ptr.vmem [resolvable:$true] %s189_s28 }
  0x22   : > { %s524_s4 = scalar_lea.vmem %s190_s28, 128  ;;  %s529_s5 = sshll.u32 %s596_s30, 4  ;;  %s530_s5 = int_to_ptr.vmem [resolvable:$false] %s529_s5 }
  0x23   : > { %p525_p8 = scmp.ne.s32.totalorder %s190_s28, %s524_s4  ;;  %s531_s7 = scalar_lea.vmem %s530_s5, 256 }
  0x24   : > { %p532_p10 = scmp.lt.s32.totalorder %s190_s28, %s530_s5  ;;  %p533_p11 = scmp.lt.s32.totalorder %s531_s7, %s524_s4 }
  0x25   : > { %p527_p13 = pnand %p525_p8, %p485_p12 }
  0x26   : > { %p534_p1 = por %p533_p11, %p532_p10 }
  0x27   : > { %p528_p0 = pneg %p527_p13 }
  0x29   : > { %p535_p2 = pnand %p534_p1, %p528_p0 }
  0x2b   : > { %538 = shalt.err (!%p535_p2)
}
  0x2c   : > { %433 = dma.hbm_to_vmem [thread:$0]  (!%p678_p9), %s187_s21, 128, %s190_s28, %s178_s29  }
  0x2d   : > { %198 = sbr.rel (%p696_p6) target bundleno = 201 (0xc9), region = 28  ;;  %s200_s25 = sand.u32 (!%p696_p6), 1, %s577_s13  }
  0x2e   : > { %s417_s26 = sshll.u32 (!%p696_p6), %s200_s25, 3  ;;  %s201_s27 = scalar_lea.sflag (!%p696_p6), [#allocation3], %s200_s25 }
  0x2f   : > { %s204_s8 = scalar_lea.vmem (!%p696_p6), [#allocation2], %s417_s26 }
  0x32   : > { %564 = dma.done.wait (%p660_p7), %s201_s27, 128  }
  0x33   : > { %566 = vsyncadd (%p660_p7), %s201_s27, 4294967168  ;;  %s210_s9 = scalar_lea.sflag [#allocation5], %s200_s25  ;;  %s213_s10 = scalar_lea.vmem [#allocation4], %s417_s26 }
  0x34   : > { %568 = dma.done.wait (%p660_p7), %s210_s9, 128  }
  0x35   : > { %570 = vsyncadd (%p660_p7), %s210_s9, 4294967168  ;;  %v252_v0 = vld [vmem:[%s204_s8] sm:$0xff]  ;;  %v253_v1 = vld [vmem:[%s213_s10] sm:$0xff]  ;;  %p244_p9 = scmp.lt.s32.totalorder %s585_s15, 1  ;;  %vm265_vm0 = vcmask 7168  }
  0x36   : > { %v254_v2 = vsub.f32 %v252_v0, %v253_v1  ;;  %v258_v4 = vmul.f32 %v252_v0, %v252_v0 }
  0x37   : > { %s762_s15 = smov (!%p244_p9, %s585_s15), 1 }
  0x38   : > { %v255_v3 = vmul.f32 %v254_v2, %v254_v2  ;;  %s419_s6 = sshll.u32 %s762_s15, 3 }
  0x39   : > { %s247_s18 = scalar_lea.vmem %s748_s2, %s419_s6  ;;  %s251_s21 = scalar_lea.vmem %s749_s3, %s419_s6 }
  0x3a   : > { %256 = vadd.xlane.f32.xlu0 %v255_v3 }
  0x3e   : > { %259 = vadd.xlane.f32.xlu0 %v258_v4 }
  0xc3   : > { %v257_v5 = vpop.xlane.xlu0 %256 }
  0xc4   : > { %266 = vst.msk [vmem:[%s247_s18] sm:$0xff] %vm265_vm0, %v257_v5 }
  0xc7   : > { %v260_v6 = vpop.xlane.xlu0 %259 }
  0xc8   : > { %267 = vst.msk [vmem:[%s251_s21] sm:$0xff] %vm265_vm0, %v260_v6 }
  0xc9 PF: > { %s20_s17 = sadd.s32 1, %s593_s17   ;;  %s754_s12 = smov %s577_s13 }
  0xca   : > { %p17_p7 = scmp.ge.s32.totalorder %s20_s17, 4   ;;  %s755_s13 = smov %s581_s14 }
  0xcb   : > { %s756_s14 = smov %s666_s24  ;;  %s757_s15 = smov %s589_s16 }
  0xcc   : > { %s758_s16 = smov %s760_s19  ;;  %19 = sbr.rel (!%p17_p7) target bundleno = 6 (0x6), region = 101 }
  0xd1   :  { %312 = vsyncpa [#allocation3], 1 }
  0xd2   :  { %314 = vsyncpa [#allocation3 + $0x1], 1 }
  0xd3   :  { %315 = vsyncpa [#allocation5], 1 }
  0xd4   :  { %317 = vsyncpa [#allocation5 + $0x1], 1 }

</bundles_post_ra>
